<compile_context>
chip_gen: v6e
topology: v6e:2x2x1
jax: 0.10.0
libtpu: 0.0.40
codegen_flags: <defaults>
</compile_context>

<pallas_src>
import math

import jax
import jax.numpy as jnp
from jax.experimental import pallas as pl
from jax.experimental.pallas import tpu as pltpu

# ---- model hyper-parameters (small, consistent with the module) -------------
BATCH = 2
SEQ = 8
HIDDEN = 32
NUM_HEAD = 4
HEAD_DIM = HIDDEN // NUM_HEAD
FF_DIM = 4 * HIDDEN
LN_EPS = 1e-5

R_TOT = BATCH * SEQ            # 16 folded rows
HR = NUM_HEAD * R_TOT          # 64 (head, row) stacked rows

# data-slab row layout (width = HIDDEN = 32); mask blocks kept 8-row aligned
ROW_POS = 0                    # 16 rows: positional encoding tiled over batch
ROW_B2 = R_TOT                 # 16
ROW_G1 = ROW_B2 + 1            # 17
ROW_BE1 = ROW_B2 + 2           # 18
ROW_G2 = ROW_B2 + 3            # 19
ROW_BE2 = ROW_B2 + 4           # 20
ROW_HMASK = 24                 # 64 rows: per-head lane mask (multiplicative)
ROW_BMASK = ROW_HMASK + HR     # 88: 64 rows: block-diagonal batch mask (additive)
DPACK_ROWS = ROW_BMASK + HR    # 152


# ------------------------------ Pallas kernel --------------------------------
def encoder_kernel(x_ref, w_ref, d_ref, o_ref):
    D = HIDDEN
    R = R_TOT

    # ---- fused weight / 128-wide bias slab (static, 128-lane aligned windows) ----
    wqkvo = w_ref[pl.ds(0, D), pl.ds(0, 4 * D)]          # (32,128) [Wq*s | Wk | Wv | Wo]
    w1 = w_ref[pl.ds(0, D), pl.ds(4 * D, 4 * D)]         # (32,128)
    w2t = w_ref[pl.ds(0, D), pl.ds(8 * D, 4 * D)]        # (32,128) = W2^T
    bqkvo = w_ref[pl.ds(D, 1), pl.ds(0, 4 * D)]          # (1,128)  [bq*s|bk|bv|bo]
    b1 = w_ref[pl.ds(D, 1), pl.ds(4 * D, 4 * D)]         # (1,128)
    wo = wqkvo[:, 3 * D:4 * D]                           # (32,32)
    bo = bqkvo[:, 3 * D:4 * D]                           # (1,32)

    # ---- width-32 data slab: pos, LayerNorm params, precomputed masks ----
    pos = d_ref[pl.ds(ROW_POS, R), :]                    # (16,32)
    b2 = d_ref[pl.ds(ROW_B2, 1), :]
    g1 = d_ref[pl.ds(ROW_G1, 1), :]
    be1 = d_ref[pl.ds(ROW_BE1, 1), :]
    g2 = d_ref[pl.ds(ROW_G2, 1), :]
    be2 = d_ref[pl.ds(ROW_BE2, 1), :]
    hmask = d_ref[pl.ds(ROW_HMASK, HR), :]               # (64,32) head lane mask
    bmask = d_ref[pl.ds(ROW_BMASK, HR), :][:, 0:R]       # (64,16) additive batch mask

    # ---- positional encoding ----
    x = x_ref[...].astype(jnp.float32) + pos             # (16,32)

    # ---- fused Q/K/V(/O-waste) projection: one 128-wide MXU pass ----
    proj = jnp.dot(x, wqkvo, preferred_element_type=jnp.float32) + bqkvo   # (16,128)
    q = proj[:, 0:D]              # already scaled by 1/sqrt(HEAD_DIM) via packed Wq/bq
    k = proj[:, D:2 * D]
    v = proj[:, 2 * D:3 * D]

    # ---- all-heads attention with two 2-D matmuls ----
    # head-major stacked Q, lanes outside each row's head zeroed
    qstack = jnp.concatenate([q] * NUM_HEAD, axis=0) * hmask               # (64,32)
    # scores for every (head, query) row against all keys: one matmul
    s = jax.lax.dot_general(qstack, k, (((1,), (1,)), ((), ())),
                            preferred_element_type=jnp.float32)            # (64,16)
    s = s + bmask                                                          # batch block-diag
    s = s - jnp.max(s, axis=-1, keepdims=True)
    p = jnp.exp(s)
    p = p * pl.reciprocal(jnp.sum(p, axis=-1, keepdims=True), approx=True)

    # context for every (head, query) row, then keep each head's lanes and fold heads
    ctxm = jnp.dot(p, v, preferred_element_type=jnp.float32) * hmask       # (64,32)
    ctx = ctxm[0:R]
    for h in range(1, NUM_HEAD):
        ctx = ctx + ctxm[h * R:(h + 1) * R]                                # (16,32)

    attn = jnp.dot(ctx, wo, preferred_element_type=jnp.float32) + bo

    # ---- residual + LayerNorm 1 ----
    h1 = x + attn
    mu1 = jnp.mean(h1, axis=-1, keepdims=True)
    var1 = jnp.mean((h1 - mu1) ** 2, axis=-1, keepdims=True)
    h1 = (h1 - mu1) * jax.lax.rsqrt(var1 + LN_EPS) * g1 + be1

    # ---- feed-forward: Linear -> ReLU -> Linear (second matmul uses W2^T, trans_b) ----
    f = jnp.dot(h1, w1, preferred_element_type=jnp.float32) + b1           # (16,128)
    f = jnp.maximum(f, 0.0)
    f = jax.lax.dot_general(f, w2t, (((1,), (1,)), ((), ())),
                            preferred_element_type=jnp.float32) + b2       # (16,32)

    # ---- residual + LayerNorm 2 ----
    h2 = h1 + f
    mu2 = jnp.mean(h2, axis=-1, keepdims=True)
    var2 = jnp.mean((h2 - mu2) ** 2, axis=-1, keepdims=True)
    out = (h2 - mu2) * jax.lax.rsqrt(var2 + LN_EPS) * g2 + be2             # (16,32)

    o_ref[...] = out.astype(o_ref.dtype)


# -------------------- one-time parameter packing (hoisted) --------------------
def pack_params(params):
    scale = 1.0 / math.sqrt(HEAD_DIM)
    wq = params["wq"] * scale          # fold 1/sqrt(dh) into Wq and bq at pack time
    bq = params["bq"] * scale

    wqkvo = jnp.concatenate([wq, params["wk"], params["wv"], params["wo"]], axis=1)
    w_top = jnp.concatenate([wqkvo, params["w1"], params["w2"].T], axis=1)   # (32,384)
    b_row = jnp.concatenate(
        [bq, params["bk"], params["bv"], params["bo"], params["b1"],
         jnp.zeros((1, 4 * HIDDEN), jnp.float32)], axis=1)                   # (1,384)
    wslab = jnp.concatenate([w_top, b_row], axis=0)                          # (33,384)

    # multiplicative head mask: row h*R+q keeps only lanes of head h
    lane_head = jnp.arange(HIDDEN) // HEAD_DIM
    row_head = jnp.arange(HR) // R_TOT
    hmask = (row_head[:, None] == lane_head[None, :]).astype(jnp.float32)    # (64,32)

    # additive block-diagonal batch mask (folded rows of different batches don't attend)
    q_batch = (jnp.arange(HR) % R_TOT) // SEQ
    k_batch = jnp.arange(R_TOT) // SEQ
    bmask = jnp.where(q_batch[:, None] == k_batch[None, :], 0.0,
                      -1e30).astype(jnp.float32)                             # (64,16)

    dpack = jnp.zeros((DPACK_ROWS, HIDDEN), jnp.float32)
    dpack = dpack.at[ROW_POS:ROW_POS + R_TOT].set(jnp.tile(params["pos"], (BATCH, 1)))
    dpack = dpack.at[ROW_B2].set(params["b2"][0])
    dpack = dpack.at[ROW_G1].set(params["g1"][0])
    dpack = dpack.at[ROW_BE1].set(params["be1"][0])
    dpack = dpack.at[ROW_G2].set(params["g2"][0])
    dpack = dpack.at[ROW_BE2].set(params["be2"][0])
    dpack = dpack.at[ROW_HMASK:ROW_HMASK + HR].set(hmask)
    dpack = dpack.at[ROW_BMASK:ROW_BMASK + HR, 0:R_TOT].set(bmask)           # (152,32)

    return {"wslab": wslab, "dpack": dpack}


# ------------------------------- wrapper --------------------------------------
def encoder_forward(x, packed):
    B, S, D = x.shape
    R = B * S
    x2 = x.reshape(R, D)

    full = lambda shape: pl.BlockSpec(shape, lambda i, _s=shape: (0,) * len(_s))

    out = pl.pallas_call(
        encoder_kernel,
        out_shape=jax.ShapeDtypeStruct((R, D), x.dtype),
        grid_spec=pltpu.PrefetchScalarGridSpec(
            num_scalar_prefetch=0,
            grid=(1,),
            in_specs=[
                full((R, D)),                          # x (all batches folded)
                full(tuple(packed["wslab"].shape)),    # fused weights + 128-wide biases
                full(tuple(packed["dpack"].shape)),    # pos, LN params, masks
            ],
            out_specs=full((R, D)),
        ),
        compiler_params=pltpu.CompilerParams(dimension_semantics=("arbitrary",)),
    )(x2, packed["wslab"], packed["dpack"])

    return out.reshape(B, S, D)


# ------------------------- pure-JAX reference ---------------------------------
def encoder_reference(x, params):
    x = x + params["pos"][None]
    q = x @ params["wq"] + params["bq"]
    k = x @ params["wk"] + params["bk"]
    v = x @ params["wv"] + params["bv"]
    B, S, D = x.shape
    q = q.reshape(B, S, NUM_HEAD, HEAD_DIM).transpose(0, 2, 1, 3)
    k = k.reshape(B, S, NUM_HEAD, HEAD_DIM).transpose(0, 2, 1, 3)
    v = v.reshape(B, S, NUM_HEAD, HEAD_DIM).transpose(0, 2, 1, 3)
    s = jnp.einsum("bhqd,bhkd->bhqk", q, k) / math.sqrt(HEAD_DIM)
    p = jax.nn.softmax(s, axis=-1)
    a = jnp.einsum("bhqk,bhkd->bhqd", p, v).transpose(0, 2, 1, 3).reshape(B, S, D)
    a = a @ params["wo"] + params["bo"]

    def ln(h, g, b):
        mu = jnp.mean(h, axis=-1, keepdims=True)
        var = jnp.mean((h - mu) ** 2, axis=-1, keepdims=True)
        return (h - mu) * jax.lax.rsqrt(var + LN_EPS) * g + b

    h1 = ln(x + a, params["g1"], params["be1"])
    f = jnp.maximum(h1 @ params["w1"] + params["b1"], 0.0)
    f = f @ params["w2"] + params["b2"]
    return ln(h1 + f, params["g2"], params["be2"])


# ------------------------- parameter construction -----------------------------
def make_params(key):
    keys = jax.random.split(key, 16)
    std = 0.02

    # sinusoidal positional encoding
    pos = jnp.arange(SEQ, dtype=jnp.float32)[:, None]
    i = jnp.arange(0, HIDDEN, 2, dtype=jnp.float32)
    div = jnp.exp(-jnp.log(10000.0) * i / HIDDEN)
    pe = jnp.zeros((SEQ, HIDDEN), jnp.float32)
    pe = pe.at[:, 0::2].set(jnp.sin(pos * div))
    pe = pe.at[:, 1::2].set(jnp.cos(pos * div))

    rnd = lambda k, shape, s=std: jax.random.normal(k, shape, jnp.float32) * s
    return {
        "pos": pe,
        "wq": rnd(keys[0], (HIDDEN, HIDDEN)),
        "wk": rnd(keys[1], (HIDDEN, HIDDEN)),
        "wv": rnd(keys[2], (HIDDEN, HIDDEN)),
        "wo": rnd(keys[3], (HIDDEN, HIDDEN)),
        "w1": rnd(keys[4], (HIDDEN, FF_DIM)),
        "w2": rnd(keys[5], (FF_DIM, HIDDEN)),
        "bq": rnd(keys[6], (1, HIDDEN)),
        "bk": rnd(keys[7], (1, HIDDEN)),
        "bv": rnd(keys[8], (1, HIDDEN)),
        "bo": rnd(keys[9], (1, HIDDEN)),
        "b1": rnd(keys[10], (1, FF_DIM)),
        "b2": rnd(keys[11], (1, HIDDEN)),
        "g1": 1.0 + rnd(keys[12], (1, HIDDEN)),
        "be1": rnd(keys[13], (1, HIDDEN)),
        "g2": 1.0 + rnd(keys[14], (1, HIDDEN)),
        "be2": rnd(keys[15], (1, HIDDEN)),
    }


if __name__ == "__main__":
    key = jax.random.PRNGKey(0)
    kx, kp = jax.random.split(key)
    x = jax.random.normal(kx, (BATCH, SEQ, HIDDEN), jnp.float32)
    params = make_params(kp)

    packed = pack_params(params)   # one-time packing, hoisted out of the hot path

    out = jax.block_until_ready(encoder_forward(x, packed))
    ref = jax.block_until_ready(encoder_reference(x, params))

    assert out.shape == (BATCH, SEQ, HIDDEN)
    # tolerance slightly relaxed to absorb the EUP approx-reciprocal in softmax
    assert jnp.allclose(out, ref, atol=2e-4, rtol=2e-4), "kernel mismatch vs reference"
    # NOTE: nn.Dropout(0.1) is defined in __init__ but never applied in forward();
    # eval-mode (identity) semantics are reproduced.
    print("KERNEL_OK")
</pallas_src>

<mosaic_0001>
module attributes {stable_mosaic.version = 11 : i64} {
  func.func @encoder_kernel(%arg0: i32, %arg1: memref<16x32xf32, #tpu.memory_space<vmem>>, %arg2: memref<33x384xf32, #tpu.memory_space<vmem>>, %arg3: memref<152x32xf32, #tpu.memory_space<vmem>>, %arg4: memref<16x32xf32, #tpu.memory_space<vmem>>) attributes {dimension_semantics = [#tpu.dimension_semantics<arbitrary>], iteration_bounds = array<i64: 1>, scalar_prefetch = 0 : i64, scratch_operands = 0 : i64, tpu.core_type = #tpu.core_type<tc>, window_params = [{pipeline_mode = #tpu.pipeline_mode<synchronous>, transform_indices = @transform_0, window_bounds = array<i64: 16, 32>}, {pipeline_mode = #tpu.pipeline_mode<synchronous>, transform_indices = @transform_1, window_bounds = array<i64: 33, 384>}, {pipeline_mode = #tpu.pipeline_mode<synchronous>, transform_indices = @transform_2, window_bounds = array<i64: 152, 32>}, {pipeline_mode = #tpu.pipeline_mode<synchronous>, transform_indices = @transform_3, window_bounds = array<i64: 16, 32>}]} {
    %c0 = arith.constant 0 : index
    %c0_0 = arith.constant 0 : index
    %0 = vector.load %arg2[%c0, %c0_0] : memref<33x384xf32, #tpu.memory_space<vmem>>, vector<32x128xf32>
    %c0_1 = arith.constant 0 : index
    %c128 = arith.constant 128 : index
    %1 = vector.load %arg2[%c0_1, %c128] : memref<33x384xf32, #tpu.memory_space<vmem>>, vector<32x128xf32>
    %c0_2 = arith.constant 0 : index
    %c256 = arith.constant 256 : index
    %2 = vector.load %arg2[%c0_2, %c256] : memref<33x384xf32, #tpu.memory_space<vmem>>, vector<32x128xf32>
    %c32 = arith.constant 32 : index
    %c0_3 = arith.constant 0 : index
    %3 = vector.load %arg2[%c32, %c0_3] : memref<33x384xf32, #tpu.memory_space<vmem>>, vector<1x128xf32>
    %c32_4 = arith.constant 32 : index
    %c128_5 = arith.constant 128 : index
    %4 = vector.load %arg2[%c32_4, %c128_5] : memref<33x384xf32, #tpu.memory_space<vmem>>, vector<1x128xf32>
    %5 = vector.extract_strided_slice %0 {offsets = [0, 96], sizes = [32, 32], strides = [1, 1]} : vector<32x128xf32> to vector<32x32xf32>
    %6 = vector.extract_strided_slice %3 {offsets = [0, 96], sizes = [1, 32], strides = [1, 1]} : vector<1x128xf32> to vector<1x32xf32>
    %c0_6 = arith.constant 0 : index
    %c0_7 = arith.constant 0 : index
    %7 = vector.load %arg3[%c0_6, %c0_7] : memref<152x32xf32, #tpu.memory_space<vmem>>, vector<16x32xf32>
    %c16 = arith.constant 16 : index
    %c0_8 = arith.constant 0 : index
    %8 = vector.load %arg3[%c16, %c0_8] : memref<152x32xf32, #tpu.memory_space<vmem>>, vector<1x32xf32>
    %c17 = arith.constant 17 : index
    %c0_9 = arith.constant 0 : index
    %9 = vector.load %arg3[%c17, %c0_9] : memref<152x32xf32, #tpu.memory_space<vmem>>, vector<1x32xf32>
    %c18 = arith.constant 18 : index
    %c0_10 = arith.constant 0 : index
    %10 = vector.load %arg3[%c18, %c0_10] : memref<152x32xf32, #tpu.memory_space<vmem>>, vector<1x32xf32>
    %c19 = arith.constant 19 : index
    %c0_11 = arith.constant 0 : index
    %11 = vector.load %arg3[%c19, %c0_11] : memref<152x32xf32, #tpu.memory_space<vmem>>, vector<1x32xf32>
    %c20 = arith.constant 20 : index
    %c0_12 = arith.constant 0 : index
    %12 = vector.load %arg3[%c20, %c0_12] : memref<152x32xf32, #tpu.memory_space<vmem>>, vector<1x32xf32>
    %c24 = arith.constant 24 : index
    %c0_13 = arith.constant 0 : index
    %13 = vector.load %arg3[%c24, %c0_13] : memref<152x32xf32, #tpu.memory_space<vmem>>, vector<64x32xf32>
    %c88 = arith.constant 88 : index
    %c0_14 = arith.constant 0 : index
    %14 = vector.load %arg3[%c88, %c0_14] : memref<152x32xf32, #tpu.memory_space<vmem>>, vector<64x32xf32>
    %15 = vector.extract_strided_slice %14 {offsets = [0, 0], sizes = [64, 16], strides = [1, 1]} : vector<64x32xf32> to vector<64x16xf32>
    %c0_15 = arith.constant 0 : index
    %c0_16 = arith.constant 0 : index
    %16 = vector.load %arg1[%c0_15, %c0_16] : memref<16x32xf32, #tpu.memory_space<vmem>>, vector<16x32xf32>
    %17 = arith.addf %16, %7 : vector<16x32xf32>
    %cst = arith.constant dense<0.000000e+00> : vector<16x128xf32>
    %18 = tpu.matmul %17, %0, %cst {dimension_numbers = #tpu.dot_dimension_numbers<[1], [0], [0], [1], [0, 0, 1, 1], [], []>} : vector<16x32xf32>, vector<32x128xf32>, vector<16x128xf32> -> vector<16x128xf32>
    %19 = vector.broadcast %3 : vector<1x128xf32> to vector<16x128xf32>
    %20 = arith.addf %18, %19 : vector<16x128xf32>
    %21 = vector.extract_strided_slice %20 {offsets = [0, 0], sizes = [16, 32], strides = [1, 1]} : vector<16x128xf32> to vector<16x32xf32>
    %22 = vector.extract_strided_slice %20 {offsets = [0, 32], sizes = [16, 32], strides = [1, 1]} : vector<16x128xf32> to vector<16x32xf32>
    %23 = vector.extract_strided_slice %20 {offsets = [0, 64], sizes = [16, 32], strides = [1, 1]} : vector<16x128xf32> to vector<16x32xf32>
    %24 = tpu.concatenate %21, %21, %21, %21 in 0 : vector<16x32xf32>, vector<16x32xf32>, vector<16x32xf32>, vector<16x32xf32> -> vector<64x32xf32>
    %25 = arith.mulf %24, %13 : vector<64x32xf32>
    %cst_17 = arith.constant dense<0.000000e+00> : vector<64x16xf32>
    %26 = tpu.matmul %25, %22, %cst_17 {dimension_numbers = #tpu.dot_dimension_numbers<[1], [1], [0], [0], [0, 0, 1, 0], [], []>} : vector<64x32xf32>, vector<16x32xf32>, vector<64x16xf32> -> vector<64x16xf32>
    %27 = arith.addf %26, %15 : vector<64x16xf32>
    %cst_18 = arith.constant dense<0xFF800000> : vector<64xf32>
    %28 = vector.multi_reduction <maximumf>, %27, %cst_18 [1] : vector<64x16xf32> to vector<64xf32>
    %29 = vector.shape_cast %28 : vector<64xf32> to vector<64x1xf32>
    %30 = vector.broadcast %29 : vector<64x1xf32> to vector<64x16xf32>
    %31 = arith.subf %27, %30 : vector<64x16xf32>
    %32 = math.exp %31 : vector<64x16xf32>
    %cst_19 = arith.constant dense<0.000000e+00> : vector<64xf32>
    %33 = vector.multi_reduction <add>, %32, %cst_19 [1] : vector<64x16xf32> to vector<64xf32>
    %34 = vector.shape_cast %33 : vector<64xf32> to vector<64x1xf32>
    %35 = tpu.reciprocal %34 {approx = true} : vector<64x1xf32> -> vector<64x1xf32>
    %36 = vector.broadcast %35 : vector<64x1xf32> to vector<64x16xf32>
    %37 = arith.mulf %32, %36 : vector<64x16xf32>
    %cst_20 = arith.constant dense<0.000000e+00> : vector<64x32xf32>
    %38 = tpu.matmul %37, %23, %cst_20 {dimension_numbers = #tpu.dot_dimension_numbers<[1], [0], [0], [1], [0, 0, 1, 1], [], []>} : vector<64x16xf32>, vector<16x32xf32>, vector<64x32xf32> -> vector<64x32xf32>
    %39 = arith.mulf %38, %13 : vector<64x32xf32>
    %40 = vector.extract_strided_slice %39 {offsets = [0, 0], sizes = [16, 32], strides = [1, 1]} : vector<64x32xf32> to vector<16x32xf32>
    %41 = vector.extract_strided_slice %39 {offsets = [16, 0], sizes = [16, 32], strides = [1, 1]} : vector<64x32xf32> to vector<16x32xf32>
    %42 = arith.addf %40, %41 : vector<16x32xf32>
    %43 = vector.extract_strided_slice %39 {offsets = [32, 0], sizes = [16, 32], strides = [1, 1]} : vector<64x32xf32> to vector<16x32xf32>
    %44 = arith.addf %42, %43 : vector<16x32xf32>
    %45 = vector.extract_strided_slice %39 {offsets = [48, 0], sizes = [16, 32], strides = [1, 1]} : vector<64x32xf32> to vector<16x32xf32>
    %46 = arith.addf %44, %45 : vector<16x32xf32>
    %cst_21 = arith.constant dense<0.000000e+00> : vector<16x32xf32>
    %47 = tpu.matmul %46, %5, %cst_21 {dimension_numbers = #tpu.dot_dimension_numbers<[1], [0], [0], [1], [0, 0, 1, 1], [], []>} : vector<16x32xf32>, vector<32x32xf32>, vector<16x32xf32> -> vector<16x32xf32>
    %48 = vector.broadcast %6 : vector<1x32xf32> to vector<16x32xf32>
    %49 = arith.addf %47, %48 : vector<16x32xf32>
    %50 = arith.addf %17, %49 : vector<16x32xf32>
    %cst_22 = arith.constant dense<0.000000e+00> : vector<16xf32>
    %51 = vector.multi_reduction <add>, %50, %cst_22 [1] : vector<16x32xf32> to vector<16xf32>
    %52 = vector.shape_cast %51 : vector<16xf32> to vector<16x1xf32>
    %cst_23 = arith.constant 3.200000e+01 : f32
    %53 = vector.broadcast %cst_23 : f32 to vector<16x1xf32>
    %54 = arith.divf %52, %53 : vector<16x1xf32>
    %55 = vector.broadcast %54 : vector<16x1xf32> to vector<16x32xf32>
    %56 = arith.subf %50, %55 : vector<16x32xf32>
    %57 = arith.mulf %56, %56 : vector<16x32xf32>
    %cst_24 = arith.constant dense<0.000000e+00> : vector<16xf32>
    %58 = vector.multi_reduction <add>, %57, %cst_24 [1] : vector<16x32xf32> to vector<16xf32>
    %59 = vector.shape_cast %58 : vector<16xf32> to vector<16x1xf32>
    %cst_25 = arith.constant 3.200000e+01 : f32
    %60 = vector.broadcast %cst_25 : f32 to vector<16x1xf32>
    %61 = arith.divf %59, %60 : vector<16x1xf32>
    %62 = vector.broadcast %54 : vector<16x1xf32> to vector<16x32xf32>
    %63 = arith.subf %50, %62 : vector<16x32xf32>
    %cst_26 = arith.constant 9.99999974E-6 : f32
    %64 = vector.broadcast %cst_26 : f32 to vector<16x1xf32>
    %65 = arith.addf %61, %64 : vector<16x1xf32>
    %66 = math.rsqrt %65 : vector<16x1xf32>
    %67 = vector.broadcast %66 : vector<16x1xf32> to vector<16x32xf32>
    %68 = arith.mulf %63, %67 : vector<16x32xf32>
    %69 = vector.broadcast %9 : vector<1x32xf32> to vector<16x32xf32>
    %70 = arith.mulf %68, %69 : vector<16x32xf32>
    %71 = vector.broadcast %10 : vector<1x32xf32> to vector<16x32xf32>
    %72 = arith.addf %70, %71 : vector<16x32xf32>
    %cst_27 = arith.constant dense<0.000000e+00> : vector<16x128xf32>
    %73 = tpu.matmul %72, %1, %cst_27 {dimension_numbers = #tpu.dot_dimension_numbers<[1], [0], [0], [1], [0, 0, 1, 1], [], []>} : vector<16x32xf32>, vector<32x128xf32>, vector<16x128xf32> -> vector<16x128xf32>
    %74 = vector.broadcast %4 : vector<1x128xf32> to vector<16x128xf32>
    %75 = arith.addf %73, %74 : vector<16x128xf32>
    %cst_28 = arith.constant 0.000000e+00 : f32
    %76 = vector.broadcast %cst_28 : f32 to vector<16x128xf32>
    %77 = arith.maximumf %75, %76 : vector<16x128xf32>
    %cst_29 = arith.constant dense<0.000000e+00> : vector<16x32xf32>
    %78 = tpu.matmul %77, %2, %cst_29 {dimension_numbers = #tpu.dot_dimension_numbers<[1], [1], [0], [0], [0, 0, 1, 0], [], []>} : vector<16x128xf32>, vector<32x128xf32>, vector<16x32xf32> -> vector<16x32xf32>
    %79 = vector.broadcast %8 : vector<1x32xf32> to vector<16x32xf32>
    %80 = arith.addf %78, %79 : vector<16x32xf32>
    %81 = arith.addf %72, %80 : vector<16x32xf32>
    %cst_30 = arith.constant dense<0.000000e+00> : vector<16xf32>
    %82 = vector.multi_reduction <add>, %81, %cst_30 [1] : vector<16x32xf32> to vector<16xf32>
    %83 = vector.shape_cast %82 : vector<16xf32> to vector<16x1xf32>
    %cst_31 = arith.constant 3.200000e+01 : f32
    %84 = vector.broadcast %cst_31 : f32 to vector<16x1xf32>
    %85 = arith.divf %83, %84 : vector<16x1xf32>
    %86 = vector.broadcast %85 : vector<16x1xf32> to vector<16x32xf32>
    %87 = arith.subf %81, %86 : vector<16x32xf32>
    %88 = arith.mulf %87, %87 : vector<16x32xf32>
    %cst_32 = arith.constant dense<0.000000e+00> : vector<16xf32>
    %89 = vector.multi_reduction <add>, %88, %cst_32 [1] : vector<16x32xf32> to vector<16xf32>
    %90 = vector.shape_cast %89 : vector<16xf32> to vector<16x1xf32>
    %cst_33 = arith.constant 3.200000e+01 : f32
    %91 = vector.broadcast %cst_33 : f32 to vector<16x1xf32>
    %92 = arith.divf %90, %91 : vector<16x1xf32>
    %93 = vector.broadcast %85 : vector<16x1xf32> to vector<16x32xf32>
    %94 = arith.subf %81, %93 : vector<16x32xf32>
    %cst_34 = arith.constant 9.99999974E-6 : f32
    %95 = vector.broadcast %cst_34 : f32 to vector<16x1xf32>
    %96 = arith.addf %92, %95 : vector<16x1xf32>
    %97 = math.rsqrt %96 : vector<16x1xf32>
    %98 = vector.broadcast %97 : vector<16x1xf32> to vector<16x32xf32>
    %99 = arith.mulf %94, %98 : vector<16x32xf32>
    %100 = vector.broadcast %11 : vector<1x32xf32> to vector<16x32xf32>
    %101 = arith.mulf %99, %100 : vector<16x32xf32>
    %102 = vector.broadcast %12 : vector<1x32xf32> to vector<16x32xf32>
    %103 = arith.addf %101, %102 : vector<16x32xf32>
    %c0_35 = arith.constant 0 : index
    %c0_36 = arith.constant 0 : index
    %104 = vector.load %arg4[%c0_35, %c0_36] : memref<16x32xf32, #tpu.memory_space<vmem>>, vector<16x32xf32>
    tpu.vector_store %arg4[%c0_35, %c0_36], %103 {strides = array<i32>} : memref<16x32xf32, #tpu.memory_space<vmem>>, vector<16x32xf32>,
    return
  }
  func.func @transform_0(%arg0: i32) -> (i32, i32) {
    %c0_i32 = arith.constant 0 : i32
    %c0_i32_0 = arith.constant 0 : i32
    %c0_i32_1 = arith.constant 0 : i32
    return %c0_i32, %c0_i32_0 : i32, i32
  }
  func.func @transform_1(%arg0: i32) -> (i32, i32) {
    %c0_i32 = arith.constant 0 : i32
    %c0_i32_0 = arith.constant 0 : i32
    %c0_i32_1 = arith.constant 0 : i32
    return %c0_i32, %c0_i32_0 : i32, i32
  }
  func.func @transform_2(%arg0: i32) -> (i32, i32) {
    %c0_i32 = arith.constant 0 : i32
    %c0_i32_0 = arith.constant 0 : i32
    %c0_i32_1 = arith.constant 0 : i32
    return %c0_i32, %c0_i32_0 : i32, i32
  }
  func.func @transform_3(%arg0: i32) -> (i32, i32) {
    %c0_i32 = arith.constant 0 : i32
    %c0_i32_0 = arith.constant 0 : i32
    %c0_i32_1 = arith.constant 0 : i32
    return %c0_i32, %c0_i32_0 : i32, i32
  }
}

</mosaic_0001>

<bundles_post_ra>
// kernel: tpu_custom_call.1
= control target key start
LH: loop header
LB: loop body
LE: loop exit
PB: predicated region body
PF: predicated region fallthrough
CT: control target
= control target key end

     0   :  { %vm56_vm0 = vcmask 261120   ;;  %s1393_s0 = inlined_call_operand.vmem [shape: f32[16,32], index: 0, kind: input, shape index: {}]   ;;  %s1394_s1 = inlined_call_operand.vmem [shape: f32[33,384], index: 1, kind: input, shape index: {}]   ;;  %s1395_s2 = inlined_call_operand.vmem [shape: f32[152,32], index: 2, kind: input, shape index: {}]   ;;  %s1396_s3 = inlined_call_operand.hbm [shape: f32[16,32], index: 3, kind: output, shape index: {}]  }
   0x1   :  { %v1135_v0 = vld [vmem:[%s1394_s1 + $0x48] sm:$0xff]  ;;  %v1140_v1 = vld [vmem:[%s1394_s1 + $0x30] sm:$0xff]  ;;  %v1146_v2 = vld [vmem:[%s1394_s1 + $0x18] sm:$0xff] }
   0x2   :  { %958 = vmatprep.subr.mxu0 %v1135_v0  ;;  %v29_v3 = vld [vmem:[%s1395_s2] sm:$0xff]  ;;  %v30_v6 = vld [vmem:[%s1395_s2 + $0x8] sm:$0xff] }
   0x3   :  { %v52_v4 = vld [vmem:[%s1393_s0] sm:$0xff]  ;;  %959 = vmatpush3.msra.mxu0 %v1135_v0  ;;  %v53_v7 = vld [vmem:[%s1393_s0 + $0x8] sm:$0xff] }
   0x4   :  { %v1155_v5 = vadd.f32 %v52_v4, %v29_v3 }
   0x5   :  { %8 = vsyncpa [#allocation3], 0  ;;  %960 = vmatprep.subr.mxu0 %v1140_v1  ;;  %v1168_v8 = vld [vmem:[%s1394_s1] sm:$0xff]  ;;  %v1173_v9 = vadd.f32 %v53_v7, %v30_v6  ;;  %v1191_v14 = vld [vmem:[%s1395_s2 + $0x18] sm:$0xff]  ;;  %s1106_s6 = smov 96   ;;  %vm285_vm1 = vcmask 130048  }
   0x6   :  { %961 = vmatpush3.msra.mxu0 %v1140_v1  ;;  %966 = vmatprep.mubr.msk.f32.mxu0 %vm56_vm0, %v1155_v5  ;;  %v1183_v10 = vld [vmem:[%s1394_s1 + $0x60] ss:$0 sm:$0xff]  ;;  %v1196_v15 = vld [vmem:[%s1395_s2 + $0x28] sm:$0xff]  ;;  %v1221_v22 = vld [vmem:[%s1395_s2 + $0x30] sm:$0xff]  ;;  %s1107_s7 = smov 64   ;;  %s1108_s8 = smov 32  }
   0x7   :  { %962 = vmatprep.subr.mxu0 %v1146_v2  ;;  %v1216_v21 = vld [vmem:[%s1395_s2 + $0x20] sm:$0xff]  ;;  %v1228_v23 = vld [vmem:[%s1395_s2 + $0x38] sm:$0xff]  ;;  %v1248_v28 = vld [vmem:[%s1395_s2 + $0x48] sm:$0xff] }
   0x8   :  { %963 = vmatpush3.msra.mxu0 %v1146_v2  ;;  %v1241_v27 = vld [vmem:[%s1395_s2 + $0x40] sm:$0xff]  ;;  %v1258_v31 = vld [vmem:[%s1395_s2 + $0x50] sm:$0xff]  ;;  %v44_v36 = vld [vmem:[%s1395_s2 + $0x58] sm:$0xff] }
   0x9   :  { %964 = vmatprep.subr.mxu0 %v1168_v8  ;;  %v45_v33 = vld [vmem:[%s1395_s2 + $0x60] sm:$0xff]  ;;  %v46_v37 = vld [vmem:[%s1395_s2 + $0x68] sm:$0xff]  ;;  %v47_v44 = vld [vmem:[%s1395_s2 + $0x70] sm:$0xff] }
   0xa   :  { %965 = vmatpush3.msra.mxu0 %v1168_v8  ;;  %v49_v49 = vld [vmem:[%s1395_s2 + $0x80] sm:$0xff]  ;;  %v48_v53 = vld [vmem:[%s1395_s2 + $0x78] sm:$0xff]  ;;  %v50_v58 = vld [vmem:[%s1395_s2 + $0x88] sm:$0xff] }
   0xb   :  { %967 = vmatmul.mubr.msk.f32.vlgmr.msra.gmra.mxu0 %vm56_vm0, %v1173_v9  ;;  %v51_v61 = vld [vmem:[%s1395_s2 + $0x90] sm:$0xff] }
  0xcb   :  { %v968_v11 = vpop.f32.mrf.mxu0 }
  0xcc   :  { %v1186_v12 = vadd.f32 %v968_v11, %v1183_v10 }
  0xcd   :  { %v129_v13 = vpop.f32.mrf.mxu0 }
  0xce   :  { %v1199_v16 = vadd.f32 %v129_v13, %v1183_v10  ;;  %150 = vrot.lane.b32.xlu0 %v1186_v12, %s1106_s6  ;;  %v139_v24 = vmul.f32 %v1186_v12, %v1216_v21  ;;  %v141_v25 = vmul.f32 %v1186_v12, %v1221_v22  ;;  %v143_v29 = vmul.f32 %v1186_v12, %v1241_v27 }
  0xcf   :  { %v145_v32 = vmul.f32 %v1186_v12, %v1258_v31 }
  0xd0   :  { %v138_v17 = vmul.f32 %v1199_v16, %v1191_v14  ;;  %v140_v18 = vmul.f32 %v1199_v16, %v1196_v15  ;;  %v142_v26 = vmul.f32 %v1199_v16, %v1228_v23  ;;  %v144_v30 = vmul.f32 %v1199_v16, %v1248_v28 }
  0xd2   :  { %148 = vrot.lane.b32.xlu0 %v1199_v16, %s1106_s6  ;;  %973 = vmatprep.mubr.msk.f32.mxu0 %vm56_vm0, %v138_v17 }
  0xd3   :  { %976 = vmatprep.mubr.msk.f32.mxu1 %vm56_vm0, %v140_v18 }
 0x140   :  { %v151_v19 = vpop.permute.xlu0 %150 }
 0x141   :  { %969 = vmatprep.subr.msk.mxu0 %vm56_vm0, %v151_v19  ;;  %1034 = vmatprep.subr.msk.mxu1 %vm56_vm0, %v151_v19 }
 0x142   :  { %970 = vmatpush3.xpose.msk.msra.mxu0 %vm56_vm0, %v151_v19  ;;  %1036 = vmatpush3.xpose.msk.msra.mxu1 %vm56_vm0, %v151_v19 }
 0x144   :  { %v149_v20 = vpop.permute.xlu0 %148 }
 0x145   :  { %971 = vmatprep.subr.msk.mxu0 %vm56_vm0, %v149_v20  ;;  %1035 = vmatprep.subr.msk.mxu1 %vm56_vm0, %v149_v20 }
 0x146   :  { %972 = vmatpush3.xpose.msk.msra.mxu0 %vm56_vm0, %v149_v20  ;;  %1037 = vmatpush3.xpose.msk.msra.mxu1 %vm56_vm0, %v149_v20 }
 0x149   :  { %974 = vmatmul.mubr.msk.f32.vlgmr.msra.gmra.mxu0 %vm56_vm0, %v139_v24  ;;  %977 = vmatmul.mubr.msk.f32.vlgmr.msra.gmra.mxu1 %vm56_vm0, %v141_v25 }
 0x14a   :  { %979 = vmatprep.mubr.msk.f32.mxu1 %vm56_vm0, %v142_v26 }
 0x14d   :  { %980 = vmatmul.mubr.msk.f32.gmra.mxu1 %vm56_vm0, %v143_v29 }
 0x14e   :  { %982 = vmatprep.mubr.msk.f32.mxu1 %vm56_vm0, %v144_v30 }
 0x151   :  { %983 = vmatmul.mubr.msk.f32.gmra.mxu1 %vm56_vm0, %v145_v32 }
 0x209   :  { %v975_v34 = vpop.f32.mrf.mxu0  ;;  %v978_v35 = vpop.f32.mrf.mxu1 }
 0x20a   :  { %v252_v38 = vadd.f32 %v975_v34, %v45_v33  ;;  %v262_v47 = vadd.f32 %v978_v35, %v47_v44 }
 0x20b   :  { %v246_v39 = vpop.f32.mrf.mxu0  ;;  %v256_v40 = vpop.f32.mrf.mxu1 }
 0x20c   :  { %v247_v41 = vadd.f32 %v246_v39, %v44_v36  ;;  %v257_v42 = vadd.f32 %v256_v40, %v46_v37  ;;  %v289_v43 = vsel %vm285_vm1, %v252_v38, -inf  ;;  %v295_v52 = vsel %vm285_vm1, %v262_v47, -inf }
 0x20d   :  { %v981_v45 = vpop.f32.mrf.mxu1  ;;  %290 = vmax.xlane.f32.xlu1 %v289_v43 }
 0x20e   :  { %v292_v46 = vsel %vm285_vm1, %v257_v42, -inf  ;;  %v286_v48 = vsel %vm285_vm1, %v247_v41, -inf  ;;  %v272_v51 = vadd.f32 %v981_v45, %v49_v49 }
 0x20f   :  { %293 = vmax.xlane.f32.xlu0 %v292_v46  ;;  %v266_v50 = vpop.f32.mrf.mxu1 }
 0x210   :  { %v267_v55 = vadd.f32 %v266_v50, %v48_v53  ;;  %v301_v56 = vsel %vm285_vm1, %v272_v51, -inf }
 0x211   :  { %287 = vmax.xlane.f32.xlu1 %v286_v48  ;;  %v984_v54 = vpop.f32.mrf.mxu1 }
 0x212   :  { %v298_v60 = vsel %vm285_vm1, %v267_v55, -inf  ;;  %v282_v62 = vadd.f32 %v984_v54, %v51_v61 }
 0x213   :  { %v276_v57 = vpop.f32.mrf.mxu1 }
 0x214   :  { %v277_v59 = vadd.f32 %v276_v57, %v50_v58  ;;  %v307_v3 = vsel %vm285_vm1, %v282_v62, -inf }
 0x215   :  { %296 = vmax.xlane.f32.xlu1 %v295_v52 }
 0x216   :  { %v304_v63 = vsel %vm285_vm1, %v277_v59, -inf }
 0x219   :  { %302 = vmax.xlane.f32.xlu1 %v301_v56 }
 0x21d   :  { %299 = vmax.xlane.f32.xlu1 %v298_v60 }
 0x221   :  { %305 = vmax.xlane.f32.xlu1 %v304_v63 }
 0x225   :  { %308 = vmax.xlane.f32.xlu1 %v307_v3 }
 0x296   :  { %v291_v4 = vpop.xlane.xlu1 %290 }
 0x297   :  { %v311_v6 = vsub.f32 %v252_v38, %v291_v4 }
 0x298   :  { %v294_v7 = vpop.xlane.xlu0 %293 }
 0x299   :  { %v320_v11 = vmul.f32 1.442695, %v311_v6  ;;  %v312_v13 = vsub.f32 %v257_v42, %v294_v7 }
 0x29a   :  { %v288_v17 = vpop.xlane.xlu1 %287 }
 0x29b   :  { %1044 = vpow2.f32 %v320_v11  ;;  %v310_v18 = vsub.f32 %v247_v41, %v288_v17  ;;  %v322_v19 = vmul.f32 1.442695, %v312_v13 }
 0x29d   :  { %v318_v20 = vmul.f32 1.442695, %v310_v18 }
 0x29e   :  { %v297_v24 = vpop.xlane.xlu1 %296 }
 0x29f   :  { %1046 = vpow2.f32 %v318_v20  ;;  %v313_v25 = vsub.f32 %v262_v47, %v297_v24 }
 0x2a0   :  { %1048 = vpow2.f32 %v322_v19 }
 0x2a1   :  { %v324_v26 = vmul.f32 1.442695, %v313_v25 }
 0x2a2   :  { %v303_v29 = vpop.xlane.xlu1 %302 }
 0x2a3   :  { %1050 = vpow2.f32 %v324_v26  ;;  %v315_v30 = vsub.f32 %v272_v51, %v303_v29 }
 0x2a5   :  { %v328_v32 = vmul.f32 1.442695, %v315_v30 }
 0x2a6   :  { %v300_v33 = vpop.xlane.xlu1 %299 }
 0x2a7   :  { %1052 = vpow2.f32 %v328_v32  ;;  %v314_v34 = vsub.f32 %v267_v55, %v300_v33 }
 0x2a8   :  { %v1297_v35 = vpop.eup %1044 }
 0x2a9   :  { %v326_v36 = vmul.f32 1.442695, %v314_v34  ;;  %v337_v37 = vsel %vm285_vm1, %v1297_v35, 0.0 }
 0x2aa   :  { %338 = vadd.xlane.f32.xlu1 %v337_v37  ;;  %v306_v38 = vpop.xlane.xlu1 %305 }
 0x2ab   :  { %1054 = vpow2.f32 %v326_v36  ;;  %v316_v39 = vsub.f32 %v277_v59, %v306_v38 }
 0x2ac   :  { %v1047_v40 = vpop.eup %1046 }
 0x2ad   :  { %v330_v41 = vmul.f32 1.442695, %v316_v39  ;;  %v334_v42 = vsel %vm285_vm1, %v1047_v40, 0.0  ;;  %v1049_v43 = vpop.eup %1048 }
 0x2ae   :  { %335 = vadd.xlane.f32.xlu1 %v334_v42  ;;  %v309_v44 = vpop.xlane.xlu1 %308  ;;  %v340_v48 = vsel %vm285_vm1, %v1049_v43, 0.0 }
 0x2af   :  { %1056 = vpow2.f32 %v330_v41  ;;  %v317_v45 = vsub.f32 %v282_v62, %v309_v44 }
 0x2b0   :  { %v1051_v46 = vpop.eup %1050 }
 0x2b1   :  { %v332_v47 = vmul.f32 1.442695, %v317_v45  ;;  %v343_v49 = vsel %vm285_vm1, %v1051_v46, 0.0 }
 0x2b2   :  { %341 = vadd.xlane.f32.xlu1 %v340_v48  ;;  %344 = vadd.xlane.f32.xlu0 %v343_v49 }
 0x2b3   :  { %1058 = vpow2.f32 %v332_v47 }
 0x2b4   :  { %v1053_v50 = vpop.eup %1052 }
 0x2b5   :  { %v349_v51 = vsel %vm285_vm1, %v1053_v50, 0.0 }
 0x2b6   :  { %350 = vadd.xlane.f32.xlu0 %v349_v51 }
 0x2b8   :  { %v1055_v52 = vpop.eup %1054 }
 0x2b9   :  { %v346_v53 = vsel %vm285_vm1, %v1055_v52, 0.0 }
 0x2ba   :  { %347 = vadd.xlane.f32.xlu1 %v346_v53 }
 0x2bc   :  { %v1057_v54 = vpop.eup %1056 }
 0x2bd   :  { %v352_v55 = vsel %vm285_vm1, %v1057_v54, 0.0 }
 0x2be   :  { %353 = vadd.xlane.f32.xlu1 %v352_v55 }
 0x2c0   :  { %v1059_v56 = vpop.eup %1058 }
 0x2c1   :  { %v355_v57 = vsel %vm285_vm1, %v1059_v56, 0.0 }
 0x2c2   :  { %356 = vadd.xlane.f32.xlu0 %v355_v57 }
 0x2cf   :  { %376 = vrot.lane.b32.xlu1 %v1186_v12, %s1107_s7 }
 0x2d3   :  { %533 = vrot.lane.b32.xlu1 %v1135_v0, %s1108_s8 }
 0x2d7   :  { %531 = vrot.lane.b32.xlu1 %v1140_v1, %s1108_s8 }
 0x2d8   :  { %374 = vrot.lane.b32.xlu0 %v1199_v16, %s1107_s7 }
 0x2db   :  { %527 = vrot.lane.b32.xlu1 %v1168_v8, %s1108_s8 }
 0x2dc   :  { %529 = vrot.lane.b32.xlu0 %v1146_v2, %s1108_s8 }
 0x2e0   :  { %540 = vrot.lane.b32.xlu0 %v1183_v10, %s1108_s8  ;;  %s1109_s8 = smov [#allocation2]  }
 0x2e1   :  { %s874_s9 = sshll.u32 %s1109_s8, 4  ;;  %s875_s9 = int_to_ptr.vmem [resolvable:$true] %s874_s9 }
 0x2e2   :  { %s1084_s10 = scalar_lea.vmem %s875_s9, 256  ;;  %p1089_p1 = scmp.lt.s32.totalorder %s875_s9, %s875_s9 }
 0x2e3   :  { %p1085_p0 = scmp.ne.s32.totalorder %s875_s9, %s1084_s10  ;;  %p1090_p2 = scmp.lt.s32.totalorder %s1084_s10, %s1084_s10 }
 0x2e5   :  { %p1091_p3 = por %p1090_p2, %p1089_p1 }
 0x2e7   :  { %p1092_p4 = pnand %p1091_p3, %p1085_p0 }
 0x333   :  { %v339_v58 = vpop.xlane.xlu1 %338 }
 0x337   :  { %v336_v59 = vpop.xlane.xlu1 %335 }
 0x338   :  { %1060 = vrcp.f32 %v336_v59 }
 0x339   :  { %1062 = vrcp.f32 %v339_v58 }
 0x33b   :  { %v342_v60 = vpop.xlane.xlu1 %341  ;;  %v345_v61 = vpop.xlane.xlu0 %344 }
 0x33c   :  { %1064 = vrcp.f32 %v342_v60 }
 0x33d   :  { %1066 = vrcp.f32 %v345_v61 }
 0x33f   :  { %v351_v62 = vpop.xlane.xlu0 %350 }
 0x343   :  { %v348_v12 = vpop.xlane.xlu1 %347 }
 0x344   :  { %1068 = vrcp.f32 %v348_v12 }
 0x345   :  { %v1061_v16 = vpop.eup %1060  ;;  %1070 = vrcp.f32 %v351_v62 }
 0x346   :  { %v366_v0 = vmul.f32 %v1061_v16, %v1047_v40  ;;  %v1063_v10 = vpop.eup %1062 }
 0x347   :  { %v354_v2 = vpop.xlane.xlu1 %353  ;;  %v367_v4 = vmul.f32 %v1063_v10, %v1297_v35  ;;  %v26_v10 = vld [vmem:[%s1394_s1 + $0x58] sm:$0xff] }
 0x348   :  { %989 = vmatprep.mubr.msk.f32.mxu0 %vm285_vm1, %v366_v0  ;;  %1072 = vrcp.f32 %v354_v2  ;;  %v21_v2 = vld [vmem:[%s1394_s1 + $0x38] sm:$0xff] }
 0x349   :  { %v1065_v63 = vpop.eup %1064 }
 0x34a   :  { %v1067_v6 = vpop.eup %1066  ;;  %v368_v7 = vmul.f32 %v1065_v63, %v1049_v43  ;;  %v25_v63 = vld [vmem:[%s1394_s1 + $0x40] sm:$0xff] }
 0x34b   :  { %v357_v1 = vpop.xlane.xlu0 %356  ;;  %v377_v8 = vpop.permute.xlu1 %376  ;;  %v369_v13 = vmul.f32 %v1067_v6, %v1051_v46 }
 0x34c   :  { %1074 = vrcp.f32 %v357_v1  ;;  %985 = vmatprep.subr.mxu0 %v377_v8  ;;  %v20_v1 = vld [vmem:[%s1394_s1 + $0x20] sm:$0xff] }
 0x34d   :  { %986 = vmatpush3.msra.mxu0 %v377_v8  ;;  %v19_v8 = vld [vmem:[%s1394_s1 + $0x8] sm:$0xff] }
 0x34f   :  { %v375_v3 = vpop.permute.xlu0 %374  ;;  %v534_v29 = vpop.permute.xlu1 %533 }
 0x350   :  { %987 = vmatprep.subr.mxu0 %v375_v3  ;;  %1001 = vmatprep.subr.mxu1 %v534_v29 }
 0x351   :  { %988 = vmatpush3.msra.mxu0 %v375_v3  ;;  %v1069_v11 = vpop.eup %1068  ;;  %1002 = vmatpush3.msra.mxu1 %v534_v29 }
 0x352   :  { %990 = vmatmul.mubr.msk.f32.vlgmr.msra.gmra.mxu0 %vm285_vm1, %v367_v4  ;;  %v1071_v17 = vpop.eup %1070  ;;  %v370_v18 = vmul.f32 %v1069_v11, %v1055_v52 }
 0x353   :  { %992 = vmatprep.mubr.msk.f32.mxu0 %vm285_vm1, %v368_v7  ;;  %v371_v20 = vmul.f32 %v1071_v17, %v1053_v50  ;;  %v532_v30 = vpop.permute.xlu1 %531  ;;  %v530_v32 = vpop.permute.xlu0 %529 }
 0x354   :  { %1003 = vmatprep.subr.mxu1 %v532_v30 }
 0x355   :  { %v1073_v19 = vpop.eup %1072  ;;  %1004 = vmatpush3.msra.mxu1 %v532_v30 }
 0x356   :  { %993 = vmatmul.mubr.msk.f32.gmra.mxu0 %vm285_vm1, %v369_v13  ;;  %v372_v25 = vmul.f32 %v1073_v19, %v1057_v54  ;;  %1005 = vmatprep.subr.mxu1 %v530_v32 }
 0x357   :  { %995 = vmatprep.mubr.msk.f32.mxu0 %vm285_vm1, %v370_v18  ;;  %1006 = vmatpush3.msra.mxu1 %v530_v32  ;;  %v528_v33 = vpop.permute.xlu1 %527  ;;  %v907_v18 = vld [vmem:[%s1395_s2 + $0x11] ss:$0 sm:$0xff] }
 0x358   :  { %1007 = vmatprep.subr.mxu1 %v528_v33 }
 0x359   :  { %v1075_v24 = vpop.eup %1074  ;;  %1008 = vmatpush3.msra.mxu1 %v528_v33  ;;  %v24_v33 = vld [vmem:[%s1394_s1 + $0x28] sm:$0xff] }
 0x35a   :  { %996 = vmatmul.mubr.msk.f32.gmra.mxu0 %vm285_vm1, %v371_v20  ;;  %v373_v26 = vmul.f32 %v1075_v24, %v1059_v56  ;;  %1023 = vmatprep.subr.mxu1 %v26_v10 }
 0x35b   :  { %998 = vmatprep.mubr.msk.f32.mxu0 %vm285_vm1, %v372_v25 }
 0x35e   :  { %999 = vmatmul.mubr.msk.f32.gmra.mxu0 %vm285_vm1, %v373_v26  ;;  %v908_v26 = vld [vmem:[%s1395_s2 + $0x12] ss:$0 sm:$0xff] }
 0x412   :  { %v991_v34 = vpop.f32.mrf.mxu0 }
 0x413   :  { %v510_v44 = vmul.f32 %v991_v34, %v1216_v21  ;;  %v23_v34 = vld [vmem:[%s1394_s1 + $0x10] sm:$0xff] }
 0x414   :  { %v470_v35 = vpop.f32.mrf.mxu0 }
 0x415   :  { %v509_v42 = vmul.f32 %v470_v35, %v1191_v14  ;;  %v541_v14 = vpop.permute.xlu0 %540  ;;  %v28_v35 = vld [vmem:[%s1394_s1 + $0x68] ss:$0 sm:$0xff] }
 0x416   :  { %v994_v36 = vpop.f32.mrf.mxu0 }
 0x417   :  { %v512_v40 = vmul.f32 %v994_v36, %v1221_v22 }
 0x418   :  { %v480_v37 = vpop.f32.mrf.mxu0 }
 0x419   :  { %v511_v39 = vmul.f32 %v480_v37, %v1196_v15  ;;  %v518_v48 = vadd.f32 %v512_v40, %v510_v44 }
 0x41a   :  { %v997_v38 = vpop.f32.mrf.mxu0 }
 0x41b   :  { %v514_v45 = vmul.f32 %v997_v38, %v1241_v27  ;;  %v517_v47 = vadd.f32 %v511_v39, %v509_v42  ;;  %v911_v42 = vld [vmem:[%s1395_s2 + $0x10] ss:$0 sm:$0xff] }
 0x41c   :  { %v490_v41 = vpop.f32.mrf.mxu0 }
 0x41d   :  { %v513_v43 = vmul.f32 %v490_v41, %v1228_v23  ;;  %v520_v52 = vadd.f32 %v518_v48, %v514_v45 }
 0x41e   :  { %v1000_v46 = vpop.f32.mrf.mxu0 }
 0x41f   :  { %v516_v49 = vmul.f32 %v1000_v46, %v1258_v31  ;;  %v519_v51 = vadd.f32 %v517_v47, %v513_v43 }
 0x420   :  { %v500_v50 = vpop.f32.mrf.mxu0 }
 0x421   :  { %v515_v15 = vmul.f32 %v500_v50, %v1248_v28  ;;  %v522_v53 = vadd.f32 %v520_v52, %v516_v49 }
 0x423   :  { %v521_v22 = vadd.f32 %v519_v51, %v515_v15 }
 0x425   :  { %1009 = vmatprep.mubr.msk.f32.mxu1 %vm56_vm0, %v521_v22 }
 0x426   :  { %1010 = vmatmul.mubr.msk.f32.vlgmr.msra.gmra.mxu1 %vm56_vm0, %v522_v53 }
 0x427   :  { %1024 = vmatpush3.xpose.msra.mxu1 %v26_v10 }
 0x428   :  { %1025 = vmatprep.subr.mxu1 %v25_v63 }
 0x42b   :  { %1026 = vmatpush3.xpose.msra.mxu1 %v25_v63 }
 0x42c   :  { %1027 = vmatprep.subr.mxu1 %v24_v33 }
 0x42f   :  { %1028 = vmatpush3.xpose.msra.mxu1 %v24_v33 }
 0x430   :  { %1029 = vmatprep.subr.mxu1 %v23_v34 }
 0x433   :  { %1030 = vmatpush3.xpose.msra.mxu1 %v23_v34 }
 0x4e6   :  { %v1011_v21 = vpop.f32.mrf.mxu1 }
 0x4e7   :  { %v621_v23 = vadd.f32 %v1011_v21, %v541_v14 }
 0x4e8   :  { %v615_v27 = vpop.f32.mrf.mxu1 }
 0x4e9   :  { %v616_v54 = vadd.f32 %v615_v27, %v541_v14  ;;  %v625_v55 = vadd.f32 %v621_v23, %v1173_v9 }
 0x4eb   :  { %v629_v31 = vsel %vm56_vm0, %v625_v55, 0.0  ;;  %v624_v56 = vadd.f32 %v616_v54, %v1155_v5  ;;  %v22_v5 = vld [vmem:[%s1394_s1 + $0x50] sm:$0xff] }
 0x4ec   :  { %630 = vadd.xlane.f32.xlu0 %v629_v31  ;;  %1012 = vmatprep.subr.mxu0 %v22_v5 }
 0x4ed   :  { %v626_v28 = vsel %vm56_vm0, %v624_v56, 0.0  ;;  %1013 = vmatpush3.msra.mxu0 %v22_v5 }
 0x4ee   :  { %627 = vadd.xlane.f32.xlu1 %v626_v28  ;;  %1014 = vmatprep.subr.mxu0 %v21_v2 }
 0x4ef   :  { %1015 = vmatpush3.msra.mxu0 %v21_v2 }
 0x4f0   :  { %1016 = vmatprep.subr.mxu0 %v20_v1 }
 0x4f1   :  { %1017 = vmatpush3.msra.mxu0 %v20_v1 }
 0x4f2   :  { %1018 = vmatprep.subr.mxu0 %v19_v8 }
 0x4f3   :  { %1019 = vmatpush3.msra.mxu0 %v19_v8 }
 0x575   :  { %v631_v57 = vpop.xlane.xlu0 %630 }
 0x576   :  { %v634_v58 = vmul.f32 0.03125, %v631_v57 }
 0x577   :  { %v628_v59 = vpop.xlane.xlu1 %627 }
 0x578   :  { %v636_v60 = vsub.f32 %v625_v55, %v634_v58  ;;  %v633_v61 = vmul.f32 0.03125, %v628_v59 }
 0x57a   :  { %v635_v12 = vsub.f32 %v624_v56, %v633_v61  ;;  %v638_v16 = vmul.f32 %v636_v60, %v636_v60 }
 0x57c   :  { %v642_v62 = vsel %vm56_vm0, %v638_v16, 0.0  ;;  %v637_v0 = vmul.f32 %v635_v12, %v635_v12  ;;  %v913_v16 = vld [vmem:[%s1395_s2 + $0x14] ss:$0 sm:$0xff] }
 0x57d   :  { %643 = vadd.xlane.f32.xlu1 %v642_v62 }
 0x57e   :  { %v639_v9 = vsel %vm56_vm0, %v637_v0, 0.0 }
 0x57f   :  { %640 = vadd.xlane.f32.xlu0 %v639_v9 }
 0x606   :  { %v644_v3 = vpop.xlane.xlu1 %643 }
 0x607   :  { %v646_v4 = vmul.f32 0.03125, %v644_v3 }
 0x608   :  { %v641_v6 = vpop.xlane.xlu0 %640 }
 0x609   :  { %v648_v7 = vadd.f32 1e-05, %v646_v4  ;;  %v645_v11 = vmul.f32 0.03125, %v641_v6 }
 0x60b   :  { %1076 = vrsqrt.f32 %v648_v7  ;;  %v647_v13 = vadd.f32 1e-05, %v645_v11 }
 0x60d   :  { %1078 = vrsqrt.f32 %v647_v13 }
 0x618   :  { %v1077_v17 = vpop.eup %1076 }
 0x619   :  { %v652_v19 = vmul.f32 %v1077_v17, %v636_v60  ;;  %v912_v60 = vld [vmem:[%s1395_s2 + $0x13] ss:$0 sm:$0xff] }
 0x61a   :  { %v1079_v20 = vpop.eup %1078 }
 0x61b   :  { %v651_v24 = vmul.f32 %v1079_v20, %v635_v12  ;;  %v658_v25 = vmul.f32 %v907_v18, %v652_v19 }
 0x61d   :  { %v657_v29 = vmul.f32 %v907_v18, %v651_v24  ;;  %v664_v32 = vadd.f32 %v908_v26, %v658_v25 }
 0x61f   :  { %v663_v30 = vadd.f32 %v908_v26, %v657_v29 }
 0x621   :  { %1020 = vmatprep.mubr.msk.f32.mxu0 %vm56_vm0, %v663_v30 }
 0x622   :  { %1021 = vmatmul.mubr.msk.f32.vlgmr.msra.gmra.mxu0 %vm56_vm0, %v664_v32 }
 0x6e2   :  { %v1022_v36 = vpop.f32.mrf.mxu0 }
 0x6e3   :  { %v743_v37 = vadd.f32 %v1022_v36, %v28_v35 }
 0x6e4   :  { %v737_v38 = vpop.f32.mrf.mxu0 }
 0x6e5   :  { %v738_v39 = vadd.f32 %v737_v38, %v28_v35  ;;  %v747_v41 = vmax.f32 %v743_v37, 0.0 }
 0x6e7   :  { %v746_v40 = vmax.f32 %v738_v39, 0.0 }
 0x6e9   :  { %1031 = vmatprep.mubr.f32.mxu1 %v746_v40 }
 0x6ea   :  { %1032 = vmatmul.mubr.f32.vlgmr.msra.gmra.mxu1 %v747_v41 }
 0x7aa   :  { %v1033_v43 = vpop.f32.mrf.mxu1 }
 0x7ab   :  { %v824_v44 = vadd.f32 %v1033_v43, %v911_v42 }
 0x7ac   :  { %v818_v45 = vpop.f32.mrf.mxu1 }
 0x7ad   :  { %v819_v46 = vadd.f32 %v911_v42, %v818_v45  ;;  %v828_v47 = vadd.f32 %v824_v44, %v664_v32 }
 0x7af   :  { %v832_v48 = vsel %vm56_vm0, %v828_v47, 0.0  ;;  %v827_v49 = vadd.f32 %v819_v46, %v663_v30 }
 0x7b0   :  { %833 = vadd.xlane.f32.xlu1 %v832_v48 }
 0x7b1   :  { %v829_v50 = vsel %vm56_vm0, %v827_v49, 0.0 }
 0x7b2   :  { %830 = vadd.xlane.f32.xlu0 %v829_v50 }
 0x839   :  { %v834_v51 = vpop.xlane.xlu1 %833 }
 0x83a   :  { %v836_v15 = vmul.f32 0.03125, %v834_v51 }
 0x83b   :  { %v831_v52 = vpop.xlane.xlu0 %830 }
 0x83c   :  { %v838_v22 = vsub.f32 %v828_v47, %v836_v15  ;;  %v835_v53 = vmul.f32 0.03125, %v831_v52 }
 0x83e   :  { %v837_v14 = vsub.f32 %v827_v49, %v835_v53  ;;  %v840_v21 = vmul.f32 %v838_v22, %v838_v22 }
 0x840   :  { %v844_v23 = vsel %vm56_vm0, %v840_v21, 0.0  ;;  %v839_v27 = vmul.f32 %v837_v14, %v837_v14 }
 0x841   :  { %845 = vadd.xlane.f32.xlu1 %v844_v23 }
 0x842   :  { %v841_v54 = vsel %vm56_vm0, %v839_v27, 0.0 }
 0x843   :  { %842 = vadd.xlane.f32.xlu0 %v841_v54 }
 0x8ca   :  { %v846_v55 = vpop.xlane.xlu1 %845 }
 0x8cb   :  { %v848_v31 = vmul.f32 0.03125, %v846_v55 }
 0x8cc   :  { %v843_v56 = vpop.xlane.xlu0 %842 }
 0x8cd   :  { %v850_v28 = vadd.f32 1e-05, %v848_v31  ;;  %v847_v57 = vmul.f32 0.03125, %v843_v56 }
 0x8cf   :  { %1080 = vrsqrt.f32 %v850_v28  ;;  %v849_v58 = vadd.f32 1e-05, %v847_v57 }
 0x8d1   :  { %1082 = vrsqrt.f32 %v849_v58 }
 0x8dc   :  { %v1081_v59 = vpop.eup %1080 }
 0x8dd   :  { %v854_v61 = vmul.f32 %v1081_v59, %v838_v22 }
 0x8de   :  { %v1083_v12 = vpop.eup %1082 }
 0x8df   :  { %v853_v62 = vmul.f32 %v1083_v12, %v837_v14  ;;  %v860_v0 = vmul.f32 %v912_v60, %v854_v61 }
 0x8e1   :  { %v859_v9 = vmul.f32 %v912_v60, %v853_v62  ;;  %v866_v5 = vadd.f32 %v913_v16, %v860_v0 }
 0x8e3   :  { %v865_v2 = vadd.f32 %v913_v16, %v859_v9  ;;  %868 = vst.msk [vmem:[#allocation2 + $0x8] sm:$0xff] %vm56_vm0, %v866_v5 }
 0x8e5   :  { %867 = vst.msk [vmem:[#allocation2] sm:$0xff] %vm56_vm0, %v865_v2 }
 0x8e6   :  { %1095 = shalt.err (!%p1092_p4)
}
 0x8e7   :  { %s1110_s2 = smov 128   ;;  %s1111_s11 = smov 8  }
 0x8e8   :  { %880 = dma.vmem_to_hbm [thread:$0]  %s875_s9, 256, %s1396_s3, [#allocation3], %s1110_s2, %s1110_s2, %s1111_s11  }
 0x8e9   :  { %1104 = dma.done.wait [#allocation3], 256  }
 0x8ea   :  { %1105 = vsyncadd [#allocation3], 4294967040 }
 0x8eb   :  { %884 = vsyncpa [#allocation3], 1 }

</bundles_post_ra>
